<compile_context>
chip_gen: v7x
topology: tpu7x:2x2x1
jax: 0.10.0
libtpu: 0.0.40
codegen_flags: <defaults>
</compile_context>

<pallas_src>
import functools

import jax
import jax.numpy as jnp
from jax.experimental import pallas as pl
from jax.experimental.pallas import tpu as pltpu


def _round_up(x, m):
    return -(-x // m) * m


def _choose_tile_n(hw, batch, c_in, c_out, itemsize):
    """Pick the spatial (lane) tile size.

    Largest tile that (a) fits a conservative, lane-padding-aware VMEM block
    budget (double-buffered feats + out blocks), (b) keeps at least 4 grid
    steps for megacore sharding / pipelining, and (c) divides HW when possible
    so every output block is full and stores are unmasked."""
    if hw <= 128:
        return hw                                   # single full-extent tile

    # Lane/sublane-padded VMEM bytes per spatial position, double-buffered:
    #   feats block [1, tile_n, C_in] -> tile_n * round_up(C_in, 128) * itemsize
    #   out   block [1, C_out, tile_n] -> round_up(C_out, 8) * tile_n * itemsize
    budget = 20 * 1024 * 1024
    per_pos = 2 * (_round_up(c_in, 128) + _round_up(c_out, 8)) * itemsize
    cap = max(128, (budget // per_pos) // 128 * 128)
    target = min(hw, 8192, cap)
    target = max(128, (target // 128) * 128)

    # Guarantee >= 4 grid steps total (v7x has 2 TensorCores; also keeps the
    # software pipeline's prefetch/writeback overlap alive).
    while target > 128 and batch * pl.cdiv(hw, target) < 4:
        target = max(128, ((target // 2) // 128) * 128)

    # Prefer a tile that divides HW (all output blocks full -> unmasked vst).
    for step in (256, 128):
        t = (target // step) * step
        while t >= step:
            if hw % t == 0:
                return t
            t -= step
    # No 128-multiple divisor of HW: use the target and let Pallas write-mask
    # the single partial edge output block.
    return target


def pti_kernel(feats_ref, w_ref, b_ref, out_ref, *, n_valid, tile_n, n_full, n_live):
    # feats_ref: [1, tile_n, C_in]   (one batch, one spatial tile; edge block may be partial)
    # w_ref:     [C_out, C_in]       (resident for every grid step)
    # b_ref:     [C_out, 1]
    # out_ref:   [1, C_out, tile_n]
    j = pl.program_id(1)

    # Tiles entirely past the last token were never written by the PyTorch
    # scatter -> plain zero fill, no matmul (feats block index is clamped in
    # the index_map, so no fresh input DMA for these tiles either).
    @pl.when(j >= n_live)
    def _():
        out_ref[...] = jnp.zeros_like(out_ref)

    @pl.when(j < n_live)
    def _():
        x = feats_ref[0]                                          # [tile_n, C_in]
        # weight [C_out, C_in] contracted with x [tile_n, C_in] on C_in
        # -> [C_out, tile_n]: result comes out directly in the channel-major,
        # lane-dense store layout (no XLU transpose of the result).
        res = jax.lax.dot_general(
            w_ref[...], x,
            dimension_numbers=(((1,), (1,)), ((), ())),
            preferred_element_type=jnp.float32)
        res = res + b_ref[...]                                    # bias [C_out, 1]

        if n_valid % tile_n == 0:
            out_ref[0] = res.astype(out_ref.dtype)
        else:
            # Only the single tile straddling N needs the boundary mask; it
            # also zeroes any columns fed by the (unpadded) partial feats read.
            @pl.when(j != n_full)
            def _():
                out_ref[0] = res.astype(out_ref.dtype)

            @pl.when(j == n_full)
            def _():
                pos = n_full * tile_n + jax.lax.broadcasted_iota(
                    jnp.int32, (1, tile_n), 1)
                out_ref[0] = jnp.where(
                    pos < n_valid, res, jnp.zeros_like(res)).astype(out_ref.dtype)


def pti_forward(feats, weight, bias, grid_size):
    """feats: [B, N, C_in]; weight: [C_out, C_in]; bias: [C_out].
    Returns [B, C_out, grid_size, grid_size]."""
    B, N, C_in = feats.shape
    C_out = weight.shape[0]
    HW = grid_size * grid_size
    assert N <= HW, "more tokens than grid positions"
    assert N >= 1

    tile_n = _choose_tile_n(HW, B, C_in, C_out, feats.dtype.itemsize)
    num_tiles = pl.cdiv(HW, tile_n)
    n_live = pl.cdiv(N, tile_n)        # tiles that contain at least one token
    n_full = N // tile_n               # index of the tile straddling N (if any)

    b2 = bias.reshape(C_out, 1)

    # Dead tiles (j >= n_live) reuse the last live feats block index -> the
    # pipeline does not issue a fresh DMA for them.
    feats_map = lambda b, j: (b, jnp.minimum(j, n_live - 1), 0)

    out_flat = pl.pallas_call(
        functools.partial(pti_kernel, n_valid=N, tile_n=tile_n,
                          n_full=n_full, n_live=n_live),
        out_shape=jax.ShapeDtypeStruct((B, C_out, HW), feats.dtype),
        grid_spec=pltpu.PrefetchScalarGridSpec(
            num_scalar_prefetch=0,
            grid=(B, num_tiles),
            in_specs=[
                pl.BlockSpec((1, tile_n, C_in), feats_map),
                pl.BlockSpec((C_out, C_in), lambda b, j: (0, 0)),
                pl.BlockSpec((C_out, 1), lambda b, j: (0, 0)),
            ],
            out_specs=pl.BlockSpec((1, C_out, tile_n), lambda b, j: (b, 0, j)),
        ),
        compiler_params=pltpu.CompilerParams(
            dimension_semantics=("parallel", "parallel"),
            # Block budget is 20 MiB; 40 MiB scoped limit leaves headroom for
            # weight/bias buffers + compiler scratch and stays well under
            # v7x's 64 MiB physical VMEM.
            vmem_limit_bytes=40 * 1024 * 1024),
    )(feats, weight, b2)

    return out_flat.reshape(B, C_out, grid_size, grid_size)


if __name__ == "__main__":
    # Small shapes consistent with the module (input_dim, out_channels,
    # grid_size scaled down).
    B, N, C_in = 2, 200, 32
    C_out, grid_size = 16, 16          # HW = 256 >= N

    key = jax.random.PRNGKey(0)
    k1, k2, k3 = jax.random.split(key, 3)
    feats = jax.random.normal(k1, (B, N, C_in), dtype=jnp.float32)
    weight = jax.random.normal(k2, (C_out, C_in), dtype=jnp.float32) * 0.05
    bias = jax.random.normal(k3, (C_out,), dtype=jnp.float32) * 0.05

    out = pti_forward(feats, weight, bias, grid_size)
    out = jax.block_until_ready(out)

    # Pure-JAX reference of the PyTorch forward.
    HW = grid_size * grid_size
    reduced = feats @ weight.T + bias                              # [B, N, C_out]
    ref = jnp.zeros((B, C_out, HW), feats.dtype)
    ref = ref.at[:, :, :N].set(jnp.transpose(reduced, (0, 2, 1)))
    ref = ref.reshape(B, C_out, grid_size, grid_size)

    assert out.shape == (B, C_out, grid_size, grid_size)
    assert jnp.allclose(out, ref, atol=1e-5, rtol=1e-5), float(jnp.abs(out - ref).max())
    print("KERNEL_OK")
</pallas_src>

<mosaic_0001>
module attributes {stable_mosaic.version = 11 : i64} {
  func.func @pti_kernel(%arg0: i32, %arg1: i32, %arg2: memref<1x128x32xf32, #tpu.memory_space<vmem>>, %arg3: memref<16x32xf32, #tpu.memory_space<vmem>>, %arg4: memref<16x1xf32, #tpu.memory_space<vmem>>, %arg5: memref<1x16x128xf32, #tpu.memory_space<vmem>>) attributes {dimension_semantics = [#tpu.dimension_semantics<parallel>, #tpu.dimension_semantics<parallel>], iteration_bounds = array<i64: 2, 2>, scalar_prefetch = 0 : i64, scratch_operands = 0 : i64, tpu.core_type = #tpu.core_type<tc>, window_params = [{transform_indices = @transform_0, window_bounds = array<i64: 1, 128, 32>}, {pipeline_mode = #tpu.pipeline_mode<synchronous>, transform_indices = @transform_1, window_bounds = array<i64: 16, 32>}, {pipeline_mode = #tpu.pipeline_mode<synchronous>, transform_indices = @transform_2, window_bounds = array<i64: 16, 1>}, {transform_indices = @transform_3, window_bounds = array<i64: 1, 16, 128>}]} {
    %c2_i32 = arith.constant 2 : i32
    %0 = arith.cmpi sge, %arg1, %c2_i32 : i32
    %1 = arith.extui %0 : i1 to i32
    %c0_i32 = arith.constant 0 : i32
    %2 = arith.cmpi ne, %1, %c0_i32 : i32
    scf.if %2 {
      %cst = arith.constant 0.000000e+00 : f32
      %6 = vector.broadcast %cst : f32 to vector<1x16x128xf32>
      %c0 = arith.constant 0 : index
      %c0_2 = arith.constant 0 : index
      %c0_3 = arith.constant 0 : index
      %7 = vector.load %arg5[%c0, %c0_2, %c0_3] : memref<1x16x128xf32, #tpu.memory_space<vmem>>, vector<1x16x128xf32>
      tpu.vector_store %arg5[%c0, %c0_2, %c0_3], %6 {strides = array<i32>} : memref<1x16x128xf32, #tpu.memory_space<vmem>>, vector<1x16x128xf32>,
    } else {
    }
    %c2_i32_0 = arith.constant 2 : i32
    %3 = arith.cmpi slt, %arg1, %c2_i32_0 : i32
    %4 = arith.extui %3 : i1 to i32
    %c0_i32_1 = arith.constant 0 : i32
    %5 = arith.cmpi ne, %4, %c0_i32_1 : i32
    scf.if %5 {
      %c0 = arith.constant 0 : index
      %c0_2 = arith.constant 0 : index
      %c0_3 = arith.constant 0 : index
      %6 = vector.load %arg2[%c0, %c0_2, %c0_3] : memref<1x128x32xf32, #tpu.memory_space<vmem>>, vector<1x128x32xf32>
      %7 = vector.shape_cast %6 : vector<1x128x32xf32> to vector<128x32xf32>
      %c0_4 = arith.constant 0 : index
      %c0_5 = arith.constant 0 : index
      %8 = vector.load %arg3[%c0_4, %c0_5] : memref<16x32xf32, #tpu.memory_space<vmem>>, vector<16x32xf32>
      %cst = arith.constant dense<0.000000e+00> : vector<16x128xf32>
      %9 = tpu.matmul %8, %7, %cst {dimension_numbers = #tpu.dot_dimension_numbers<[1], [1], [0], [0], [0, 0, 1, 0], [], []>} : vector<16x32xf32>, vector<128x32xf32>, vector<16x128xf32> -> vector<16x128xf32>
      %c0_6 = arith.constant 0 : index
      %c0_7 = arith.constant 0 : index
      %10 = vector.load %arg4[%c0_6, %c0_7] : memref<16x1xf32, #tpu.memory_space<vmem>>, vector<16x1xf32>
      %11 = vector.broadcast %10 : vector<16x1xf32> to vector<16x128xf32>
      %12 = arith.addf %9, %11 : vector<16x128xf32>
      %c1_i32 = arith.constant 1 : i32
      %13 = arith.cmpi ne, %arg1, %c1_i32 : i32
      %14 = arith.extui %13 : i1 to i32
      %c0_i32_8 = arith.constant 0 : i32
      %15 = arith.cmpi ne, %14, %c0_i32_8 : i32
      scf.if %15 {
        %c0_11 = arith.constant 0 : index
        %c0_12 = arith.constant 0 : index
        %c0_13 = arith.constant 0 : index
        %19 = vector.load %arg5[%c0_11, %c0_12, %c0_13] : memref<1x16x128xf32, #tpu.memory_space<vmem>>, vector<1x16x128xf32>
        %20 = vector.shape_cast %19 : vector<1x16x128xf32> to vector<16x128xf32>
        %21 = vector.shape_cast %12 : vector<16x128xf32> to vector<1x16x128xf32>
        tpu.vector_store %arg5[%c0_11, %c0_12, %c0_13], %21 {strides = array<i32>} : memref<1x16x128xf32, #tpu.memory_space<vmem>>, vector<1x16x128xf32>,
      } else {
      }
      %c1_i32_9 = arith.constant 1 : i32
      %16 = arith.cmpi eq, %arg1, %c1_i32_9 : i32
      %17 = arith.extui %16 : i1 to i32
      %c0_i32_10 = arith.constant 0 : i32
      %18 = arith.cmpi ne, %17, %c0_i32_10 : i32
      scf.if %18 {
        %19 = tpu.iota {dimensions = array<i32: 1>} : vector<1x128xi32>
        %c128_i32 = arith.constant 128 : i32
        %20 = vector.broadcast %c128_i32 : i32 to vector<1x128xi32>
        %21 = arith.addi %20, %19 : vector<1x128xi32>
        %c200_i32 = arith.constant 200 : i32
        %22 = vector.broadcast %c200_i32 : i32 to vector<1x128xi32>
        %23 = arith.cmpi slt, %21, %22 : vector<1x128xi32>
        %cst_11 = arith.constant 0.000000e+00 : f32
        %24 = vector.broadcast %cst_11 : f32 to vector<16x128xf32>
        %25 = vector.shape_cast %23 : vector<1x128xi1> to vector<1x128xi1>
        %26 = vector.broadcast %25 : vector<1x128xi1> to vector<16x128xi1>
        %27 = arith.select %26, %12, %24 : vector<16x128xi1>, vector<16x128xf32>
        %c0_12 = arith.constant 0 : index
        %c0_13 = arith.constant 0 : index
        %c0_14 = arith.constant 0 : index
        %28 = vector.load %arg5[%c0_12, %c0_13, %c0_14] : memref<1x16x128xf32, #tpu.memory_space<vmem>>, vector<1x16x128xf32>
        %29 = vector.shape_cast %28 : vector<1x16x128xf32> to vector<16x128xf32>
        %30 = vector.shape_cast %27 : vector<16x128xf32> to vector<1x16x128xf32>
        tpu.vector_store %arg5[%c0_12, %c0_13, %c0_14], %30 {strides = array<i32>} : memref<1x16x128xf32, #tpu.memory_space<vmem>>, vector<1x16x128xf32>,
      } else {
      }
    } else {
    }
    return
  }
  func.func @transform_0(%arg0: i32, %arg1: i32) -> (i32, i32, i32) {
    %c1_i32 = arith.constant 1 : i32
    %0 = arith.minsi %arg1, %c1_i32 : i32
    %c0_i32 = arith.constant 0 : i32
    %c0_i32_0 = arith.constant 0 : i32
    return %arg0, %0, %c0_i32 : i32, i32, i32
  }
  func.func @transform_1(%arg0: i32, %arg1: i32) -> (i32, i32) {
    %c0_i32 = arith.constant 0 : i32
    %c0_i32_0 = arith.constant 0 : i32
    %c0_i32_1 = arith.constant 0 : i32
    return %c0_i32, %c0_i32_0 : i32, i32
  }
  func.func @transform_2(%arg0: i32, %arg1: i32) -> (i32, i32) {
    %c0_i32 = arith.constant 0 : i32
    %c0_i32_0 = arith.constant 0 : i32
    %c0_i32_1 = arith.constant 0 : i32
    return %c0_i32, %c0_i32_0 : i32, i32
  }
  func.func @transform_3(%arg0: i32, %arg1: i32) -> (i32, i32, i32) {
    %c0_i32 = arith.constant 0 : i32
    %c0_i32_0 = arith.constant 0 : i32
    return %arg0, %c0_i32, %arg1 : i32, i32, i32
  }
}

</mosaic_0001>

<bundles_post_ra>
// kernel: tpu_custom_call.1
= control target key start
LH: loop header
LB: loop body
LE: loop exit
PB: predicated region body
PF: predicated region fallthrough
CT: control target
= control target key end

     0   :  { %8 = vsyncpa [#allocation3], 0  ;;  %s1082_s0 = inlined_call_operand.vmem [shape: f32[2,200,32], index: 0, kind: input, shape index: {}]   ;;  %s1083_s1 = inlined_call_operand.vmem [shape: f32[16,32], index: 1, kind: input, shape index: {}]   ;;  %s1084_s2 = inlined_call_operand.vmem [shape: f32[16,1], index: 2, kind: input, shape index: {}]   ;;  %s1085_s3 = inlined_call_operand.hbm [shape: f32[2,16,256], index: 3, kind: output, shape index: {}]  }
   0x1   :  { %10 = vsyncpa [#allocation3 + $0x1], 0  ;;  %s855_s12 = smov 0   ;;  %s857_s13 = smov 0  }
   0x2   :  { %s859_s14 = smov 0   ;;  %s861_s15 = smov 0  }
   0x3   :  { %s863_s16 = smov 0   ;;  %s865_s17 = smov 0  }
   0x4   :  { %s867_s18 = smov 0   ;;  %s869_s19 = smov 0  }
   0x5 LB: > { %s519_s20 = sadd.s32 4294967295, %s827_s19   ;;  %s520_s21 = sadd.s32 4294967294, %s827_s19   ;;  %s827_s19 = sphi %s869_s19, %s16_s19   ;;  %s823_s18 = sphi %s867_s18, %s1096_s18   ;;  %s819_s17 = sphi %s865_s17, %s1095_s17   ;;  %s815_s16 = sphi %s863_s16, %s1094_s16   ;;  %s811_s15 = sphi %s861_s15, %s1093_s15   ;;  %s807_s14 = sphi %s859_s14, %s1092_s14   ;;  %s803_s13 = sphi %s857_s13, %s1091_s13   ;;  %s799_s12 = sphi %s855_s12, %s1090_s12  }
   0x6   : > { %s25_s22 = sadd.s32 1, %s819_s17  ;;  %s28_s23 = sadd.s32 1, %s823_s18 }
   0x7   : > { %p26_p0 = scmp.ge.s32.totalorder %s25_s22, 2  ;;  %p121_p1 = scmp.ne.s32.totalorder %s807_s14, %s803_s13 }
   0x8   : > { %p122_p2 = scmp.eq.s32.totalorder %s519_s20, 3  ;;  %p127_p5 = scmp.ne.s32.totalorder %s803_s13, %s799_s12 }
   0x9   : > { %s1098_s22 = smov (%p26_p0, %s25_s22), 0  ;;  %s1100_s23 = smov (!%p26_p0, %s28_s23), %s823_s18 }
   0xa   : > { %s107_s24 = ssub.s32 %s819_s17, %s1098_s22  ;;  %p906_p3 = por %p122_p2, %p121_p1 }
   0xb   : > { %p30_p4 = scmp.ge.s32.totalorder %s1100_s23, 2  ;;  %p128_p6 = scmp.eq.s32.totalorder %s520_s21, 3 }
   0xc   : > { %p523_p7 = scmp.ge.s32.totalorder %s827_s19, 1  ;;  %p177_p9 = scmp.lt.s32.totalorder %s827_s19, 5 }
   0xd   : > { %s1102_s23 = smov (%p30_p4, %s1100_s23), 0  ;;  %p915_p8 = por %p128_p6, %p127_p5 }
   0xe   : > { %s106_s27 = ssub.s32 %s823_s18, %s1102_s23  ;;  %s111_s28 = sadd.s32 1, %s807_s14 }
   0xf   : > { %s108_s29 = sor.u32 %s107_s24, %s106_s27  ;;  %p178_p10 = pnand %p523_p7, %p177_p9 }
  0x10   : > { %p109_p11 = scmp.eq.s32.totalorder %s108_s29, 0  ;;  %s208_s4 = sand.u32 (!%p178_p10), 1, %s803_s13  }
  0x11   : > { %181 = sbr.rel (%p178_p10) target bundleno = 355 (0x163), region = 32  ;;  %p211_p12 = scmp.lt.s32.totalorder (!%p178_p10), %s811_s15, 1 }
  0x12   : > { %s924_s30 = scalar_select %p109_p11, %s807_s14, %s111_s28  }
  0x13   : > { %s524_s5 = sshll.u32 (!%p178_p10), %s208_s4, 4  ;;  %p218_p13 = scmp.lt.s32.totalorder (!%p178_p10), %s815_s16, 1 }
  0x14   : > { %s938_s27 = scalar_lea.vmem (!%p178_p10), [#allocation2], %s524_s5  ;;  %p527_p1 = scmp.lt.s32.totalorder (!%p178_p10), %s811_s15, 2 }
  0x18   : > { %s212_s6 = scalar_select %p211_p12, %s811_s15, 1 }
  0x19   : > { %s219_s7 = scalar_select %p218_p13, %s815_s16, 1 }
  0x1a   : > { %s525_s8 = sshll.u32 %s212_s6, 4  ;;  %236 = sbr.rel (%p527_p1) target bundleno = 33 (0x21), region = 36  ;;  %v829_v0 = vmov (!%p527_p1), 0.0  }
  0x1b   : > { %p220_p0 = scmp.lt.s32.totalorder %s525_s8, 24  ;;  %s655_s9 = smul.u32 25, %s219_s7  ;;  %237 = vst [vmem:[%s938_s27] sm:$0xff] (!%p527_p1), %v829_v0  ;;  %238 = vst [vmem:[%s938_s27 + $0x8] sm:$0xff] (!%p527_p1), %v829_v0 }
  0x1d   : > { %s1104_s8 = smov (!%p220_p0, %s525_s8), 24 }
  0x1e   : > { %s223_s10 = sadd.s32 %s655_s9, %s1104_s8 }
  0x1f   : > { %s526_s11 = sshll.u32 %s223_s10, 3 }
  0x20   : > { %s936_s24 = scalar_lea.vmem %s1082_s0, %s526_s11 }
  0x21 PF: > { %p528_p2 = scmp.ge.s32.totalorder %s811_s15, 2 }
  0x22   : > { %v243_v1 = vld [vmem:[%s936_s24] sm:$0xff] (!%p528_p2)  ;;  %v244_v2 = vld [vmem:[%s936_s24 + $0x8] sm:$0xff] (!%p528_p2)  ;;  %vm273_vm0 = vcmask (!%p528_p2), 261120   ;;  %v245_v3 = vld [vmem:[%s936_s24 + $0x10] sm:$0xff] (!%p528_p2)  ;;  %v830_v7 = vmov (!%p528_p2), 0   ;;  %p547_p4 = scmp.eq.s32.totalorder (!%p528_p2), %s811_s15, 1 }
  0x23   : > { %242 = sbr.rel (%p528_p2) target bundleno = 327 (0x147), region = 40  ;;  %v607_v4 = vpack.c.bf16 (!%p528_p2), %v244_v2, %v243_v1  ;;  %vm949_vm1 = vmpackc.low (!%p528_p2), %vm273_vm0, %vm273_vm0  ;;  %v246_v6 = vld [vmem:[%s936_s24 + $0x18] sm:$0xff] (!%p528_p2)  ;;  %732 = vset.pattern.permute.xlu0 (!%p528_p2), %v830_v7  ;;  %v259_v9 = vld [vmem:[%s1083_s1] sm:$0xff] (!%p528_p2) }
  0x24   : > { %v613_v8 = vpack.c.bf16 (!%p528_p2), %v246_v6, %v245_v3  ;;  %v247_v10 = vld [vmem:[%s936_s24 + $0x20] sm:$0xff] (!%p528_p2)  ;;  %v248_v11 = vld [vmem:[%s936_s24 + $0x28] sm:$0xff] (!%p528_p2)  ;;  %604 = vmatprep.mubr.msk.f32.mxu0 (!%p528_p2), %vm273_vm0, %v259_v9  ;;  %v249_v15 = vld [vmem:[%s936_s24 + $0x30] sm:$0xff] (!%p528_p2) }
  0x25   : > { %609 = vmatprep.subr.msk.bf16.mxu0 (!%p528_p2), %vm949_vm1, %v607_v4  ;;  %v261_v12 = vld [vmem:[%s1084_s2] sm:$0xff] (!%p528_p2)  ;;  %v262_v13 = vld [vmem:[%s1084_s2 + $0x8] sm:$0xff] (!%p528_p2)  ;;  %v619_v14 = vpack.c.bf16 (!%p528_p2), %v248_v11, %v247_v10  ;;  %v250_v16 = vld [vmem:[%s936_s24 + $0x38] sm:$0xff] (!%p528_p2) }
  0x26   : > { %612 = vmatpush3.bf16.xpose.msk.msra.mxu0 (!%p528_p2), %vm949_vm1, %v607_v4  ;;  %265 = vperm.xlu0 (!%p528_p2), %732, %v261_v12   ;;  %v625_v17 = vpack.c.bf16 (!%p528_p2), %v250_v16, %v249_v15  ;;  %v251_v18 = vld [vmem:[%s936_s24 + $0x40] sm:$0xff] (!%p528_p2)  ;;  %v252_v19 = vld [vmem:[%s936_s24 + $0x48] sm:$0xff] (!%p528_p2)  ;;  %v253_v21 = vld [vmem:[%s936_s24 + $0x50] sm:$0xff] (!%p528_p2) }
  0x27   : > { %615 = vmatprep.subr.msk.bf16.mxu0 (!%p528_p2), %vm949_vm1, %v613_v8  ;;  %v631_v20 = vpack.c.bf16 (!%p528_p2), %v252_v19, %v251_v18  ;;  %v254_v22 = vld [vmem:[%s936_s24 + $0x58] sm:$0xff] (!%p528_p2)  ;;  %v255_v24 = vld [vmem:[%s936_s24 + $0x60] sm:$0xff] (!%p528_p2)  ;;  %v256_v25 = vld [vmem:[%s936_s24 + $0x68] sm:$0xff] (!%p528_p2) }
  0x28   : > { %v637_v23 = vpack.c.bf16 (!%p528_p2), %v254_v22, %v253_v21  ;;  %v643_v26 = vpack.c.bf16 (!%p528_p2), %v256_v25, %v255_v24  ;;  %v257_v27 = vld [vmem:[%s936_s24 + $0x70] sm:$0xff] (!%p528_p2)  ;;  %v258_v28 = vld [vmem:[%s936_s24 + $0x78] sm:$0xff] (!%p528_p2)  ;;  %v260_v30 = vld [vmem:[%s1083_s1 + $0x8] sm:$0xff] (!%p528_p2) }
  0x29   : > { %v649_v29 = vpack.c.bf16 (!%p528_p2), %v258_v28, %v257_v27 }
  0x2a   : > { %270 = vperm.xlu0 %732, %v262_v13  }
  0x2e   : > { %618 = vmatpush3.bf16.xpose.msk.msra.mxu0 %vm949_vm1, %v613_v8 }
  0x2f   : > { %621 = vmatprep.subr.msk.bf16.mxu0 %vm949_vm1, %v619_v14 }
  0x36   : > { %624 = vmatpush3.bf16.xpose.msk.msra.mxu0 %vm949_vm1, %v619_v14 }
  0x37   : > { %627 = vmatprep.subr.msk.bf16.mxu0 %vm949_vm1, %v625_v17 }
  0x3e   : > { %630 = vmatpush3.bf16.xpose.msk.msra.mxu0 %vm949_vm1, %v625_v17 }
  0x3f   : > { %633 = vmatprep.subr.msk.bf16.mxu0 %vm949_vm1, %v631_v20 }
  0x46   : > { %636 = vmatpush3.bf16.xpose.msk.msra.mxu0 %vm949_vm1, %v631_v20 }
  0x47   : > { %639 = vmatprep.subr.msk.bf16.mxu0 %vm949_vm1, %v637_v23 }
  0x4e   : > { %642 = vmatpush3.bf16.xpose.msk.msra.mxu0 %vm949_vm1, %v637_v23 }
  0x4f   : > { %645 = vmatprep.subr.msk.bf16.mxu0 %vm949_vm1, %v643_v26 }
  0x56   : > { %648 = vmatpush3.bf16.xpose.msk.msra.mxu0 %vm949_vm1, %v643_v26 }
  0x57   : > { %651 = vmatprep.subr.msk.bf16.mxu0 %vm949_vm1, %v649_v29 }
  0x5e   : > { %654 = vmatpush3.bf16.xpose.msk.msra.mxu0 %vm949_vm1, %v649_v29 }
  0x65   : > { %605 = vmatmul.mubr.msk.f32.vlgmr.msra.gmra.mrb[0].mxu0 %vm273_vm0, %v260_v30 }
  0xa5   : > { %v266_v31 = vpop.permute.xlu0 %265 }
  0xa9   : > { %v271_v32 = vpop.permute.xlu0 %270 }
 0x134   : > { %406 = sbr.rel (%p547_p4) target bundleno = 317 (0x13d), region = 44 }
 0x138   : > { %v606_v33 = vpop.f32.mrb[0].mxu0 }
 0x139   : > { %v400_v34 = vadd.f32 %v606_v33, %v271_v32  ;;  %v394_v35 = vpop.f32.mrb[1].mxu0 }
 0x13a   : > { %v395_v36 = vadd.f32 %v394_v35, %v266_v31 }
 0x13b   : > { %408 = vst [vmem:[%s938_s27 + $0x8] sm:$0xff] %v400_v34 }
 0x13c   : > { %407 = vst [vmem:[%s938_s27] sm:$0xff] %v395_v36 }
 0x13d PF: > { %p548_p5 = scmp.ne.s32.totalorder %s811_s15, 1 }
 0x13e   : > { %v413_v37 = vlaneseq (!%p548_p5) }
 0x13f   : > { %412 = sbr.rel (%p548_p5) target bundleno = 327 (0x147), region = 48 }
 0x140   : > { %v414_v38 = vand.u32 (!%p548_p5), 127, %v413_v37 }
 0x142   : > { %v415_v39 = vadd.s32 (!%p548_p5), 128, %v414_v38 }
 0x144   : > { %vm416_vm2 = vcmp.lt.s32.totalorder (!%p548_p5), %v415_v39, 200 }
 0x145   : > { %v419_v40 = vsel (!%p548_p5), %vm416_vm2, %v395_v36, 0.0  ;;  %v420_v41 = vsel (!%p548_p5), %vm416_vm2, %v400_v34, 0.0 }
 0x146   : > { %421 = vst [vmem:[%s938_s27] sm:$0xff] %v419_v40  ;;  %422 = vst [vmem:[%s938_s27 + $0x8] sm:$0xff] %v420_v41 }
 0x147 PF: > { %s550_s11 = sshll.u32 %s815_s16, 2  ;;  %s438_s21 = sshll.u32 %s938_s27, 4  ;;  %s1021_s21 = int_to_ptr.vmem [resolvable:$true] %s438_s21 }
 0x148   : > { %s435_s20 = sadd.s32 %s811_s15, %s550_s11  ;;  %s1030_s6 = scalar_lea.sflag [#allocation3], %s208_s4 }
 0x149   : > { %s551_s24 = sshll.u32 %s435_s20, 7  ;;  %s733_s7 = scalar_lea.vmem %s1021_s21, 256 }
 0x14a   : > { %s1026_s5 = scalar_lea.hbm %s1085_s3, %s551_s24  ;;  %p734_p6 = scmp.ne.s32.totalorder %s1021_s21, %s733_s7 }
 0x14b   : > { %s831_s15 = smov [#allocation2]  }
 0x14c   : > { %p735_p7 = pnand %p734_p6, %p906_p3  ;;  %s737_s16 = sshll.u32 %s831_s15, 4  ;;  %s738_s16 = int_to_ptr.vmem [resolvable:$false] %s737_s16 }
 0x14d   : > { %s739_s27 = scalar_lea.vmem %s738_s16, 512  ;;  %p740_p10 = scmp.lt.s32.totalorder %s1021_s21, %s738_s16 }
 0x14e   : > { %p736_p9 = pneg %p735_p7  ;;  %p741_p11 = scmp.lt.s32.totalorder %s739_s27, %s733_s7 }
 0x150   : > { %p742_p12 = por %p741_p11, %p740_p10 }
 0x152   : > { %p743_p13 = pnand %p742_p12, %p736_p9 }
 0x154   : > { %746 = shalt.err (!%p743_p13)
}
 0x155   : > { %s747_s4 = scalar_lea.hbm %s1026_s5, 256  ;;  %s751_s10 = scalar_lea.hbm %s1085_s3, 1024 }
 0x156   : > { %p748_p0 = scmp.ne.s32.totalorder %s1026_s5, %s747_s4  ;;  %p752_p4 = scmp.lt.u32.totalorder %s1026_s5, %s1085_s3 }
 0x157   : > { %p753_p5 = scmp.lt.u32.totalorder %s751_s10, %s747_s4  ;;  %p755_p7 = scmp.lt.u32.totalorder %s747_s4, %s1026_s5 }
 0x158   : > { %p749_p1 = pnand %p748_p0, %p906_p3 }
 0x159   : > { %p754_p6 = por %p753_p5, %p752_p4 }
 0x15a   : > { %p750_p2 = pneg %p749_p1 }
 0x15b   : > { %p756_p9 = por %p755_p7, %p754_p6 }
 0x15d   : > { %p757_p10 = pnand %p756_p9, %p750_p2 }
 0x15f   : > { %760 = shalt.err (!%p757_p10)
}
 0x160   : > { %s832_s24 = smov 128   ;;  %s833_s28 = smov 256  }
 0x161   : > { %s834_s29 = smov 8  }
 0x162   : > { %656 = dma.vmem_to_hbm [thread:$0]  (%p906_p3), %s1021_s21, 256, %s1026_s5, %s1030_s6, %s832_s24, %s833_s28, %s834_s29  }
 0x163 PF: > { %p662_p11 = scmp.ge.s32.totalorder %s827_s19, 2  ;;  %s453_s7 = sand.u32 1, %s799_s12  }
 0x164   : > { %s454_s15 = scalar_lea.sflag [#allocation3], %s453_s7 }
 0x165   : > { %p659_p12 = pnand %p662_p11, %p915_p8 }
 0x167   : > { %794 = dma.done.wait (!%p659_p12), %s454_s15, 256  }
 0x168   : > { %796 = vsyncadd (!%p659_p12), %s454_s15, 4294967040  ;;  %s16_s19 = sadd.s32 1, %s827_s19   ;;  %s1090_s12 = smov %s803_s13 }
 0x169   : > { %p13_p13 = scmp.ge.s32.totalorder %s16_s19, 6   ;;  %s1091_s13 = smov %s807_s14 }
 0x16a   : > { %s1092_s14 = smov %s924_s30  ;;  %s1093_s15 = smov %s819_s17 }
 0x16b   : > { %s1094_s16 = smov %s823_s18  ;;  %s1095_s17 = smov %s1098_s22 }
 0x16c   : > { %s1096_s18 = smov %s1102_s23  ;;  %15 = sbr.rel (!%p13_p13) target bundleno = 5 (0x5), region = 83 }
 0x173   :  { %459 = vsyncpa [#allocation3], 1 }
 0x174   :  { %461 = vsyncpa [#allocation3 + $0x1], 1 }

</bundles_post_ra>
